<compile_context>
chip_gen: v7x
topology: tpu7x:2x2x1
jax: 0.10.0
libtpu: 0.0.40
codegen_flags: <defaults>
</compile_context>

<pallas_src>
import jax
import jax.numpy as jnp
from jax import lax
from jax.experimental import pallas as pl
from jax.experimental.pallas import tpu as pltpu

_LN_EPS = 1e-5  # torch.nn.LayerNorm default


def _lucas_kan_stack_kernel(x_ref, *refs):
    """Fused forward over all layers for one batch tile.

    refs layout: (c_0, ln_0, c_1, ln_1, ..., out_ref)
      c_l  : (degree+1, I_l, O_l)  lucas_coeffs, degree-major
      ln_l : (2, O_l)              row 0 = gamma, row 1 = beta
    """
    out_ref = refs[-1]
    param_refs = refs[:-1]
    n_layers = len(param_refs) // 2

    h = x_ref[...].astype(jnp.float32)                      # (TB, I0)

    for l in range(n_layers):
        c_ref = param_refs[2 * l]                           # (D+1, I, O)
        ln_ref = param_refs[2 * l + 1]                      # (2, O)
        deg_p1 = c_ref.shape[0]
        out_dims = c_ref.shape[2]

        t = jnp.tanh(h)                                     # (TB, I)

        # Degree-0 Lucas term (L0 == 2) is batch independent -> per-output bias.
        bias = 2.0 * jnp.sum(c_ref[0], axis=0, keepdims=True)   # (1, O)

        if deg_p1 == 1:
            y = jnp.broadcast_to(bias, (t.shape[0], out_dims)).astype(jnp.float32)
        else:
            # L1 = t
            y = jnp.dot(t, c_ref[1],
                        preferred_element_type=jnp.float32,
                        precision=lax.Precision.HIGHEST) + bias
            lm2, lm1 = 2.0, t
            for d in range(2, deg_p1):
                lcur = t * lm1 + lm2                        # Lucas recurrence (VPU)
                y = y + jnp.dot(lcur, c_ref[d],
                                preferred_element_type=jnp.float32,
                                precision=lax.Precision.HIGHEST)
                lm2, lm1 = lm1, lcur

        # LayerNorm over the output feature axis (biased variance, eps=1e-5).
        mean = jnp.mean(y, axis=-1, keepdims=True)
        centered = y - mean
        var = jnp.mean(centered * centered, axis=-1, keepdims=True)
        y_norm = centered * lax.rsqrt(var + _LN_EPS)

        ln = ln_ref[...]                                    # (2, O)
        h = y_norm * ln[0:1, :] + ln[1:2, :]                # broadcast (1, O)

    out_ref[...] = h.astype(out_ref.dtype)


def lucas_kan_forward(x, layer_params, *, batch_tile=8, interpret=False):
    """Fused Lucas_KAN forward.

    x            : (..., I0) array; flattened to (-1, I0) like torch .view.
    layer_params : list of (coeffs (I, O, degree+1), gamma (O,), beta (O,)).
    returns      : (N, O_last) float32.
    """
    assert batch_tile % 8 == 0, "batch tile must be sublane aligned"
    in_dims0 = layer_params[0][0].shape[0]
    x = x.reshape(-1, in_dims0).astype(jnp.float32)
    n = x.shape[0]

    # Pad batch to a multiple of the tile so every block is (8k, full-dim).
    tb = batch_tile
    n_pad = pl.cdiv(n, tb) * tb
    if n_pad != n:
        x = jnp.pad(x, ((0, n_pad - n), (0, 0)))

    kernel_inputs = [x]
    in_specs = [pl.BlockSpec((tb, in_dims0), lambda b: (b, 0))]

    for coeffs, gamma, beta in layer_params:
        i_dims, o_dims, dp1 = coeffs.shape
        # Pack params: one contiguous (D+1, I, O) coeff block + one (2, O)
        # gamma/beta block per layer -> two DMAs per layer instead of many.
        c_packed = jnp.transpose(coeffs, (2, 0, 1)).astype(jnp.float32)
        ln_packed = jnp.stack([gamma, beta], axis=0).astype(jnp.float32)
        kernel_inputs += [c_packed, ln_packed]
        in_specs += [
            pl.BlockSpec((dp1, i_dims, o_dims), lambda b: (0, 0, 0)),
            pl.BlockSpec((2, o_dims), lambda b: (0, 0)),
        ]

    out_dims = layer_params[-1][0].shape[1]
    out = pl.pallas_call(
        _lucas_kan_stack_kernel,
        out_shape=jax.ShapeDtypeStruct((n_pad, out_dims), jnp.float32),
        grid=(n_pad // tb,),
        in_specs=in_specs,
        out_specs=pl.BlockSpec((tb, out_dims), lambda b: (b, 0)),
        compiler_params=pltpu.CompilerParams(
            dimension_semantics=("parallel",)),  # batch axis -> megacore on v7x
        interpret=interpret,
    )(*kernel_inputs)
    return out[:n]


# ----------------------------------------------------------------------------
# Pure-JAX reference mirroring the PyTorch module line by line.
# ----------------------------------------------------------------------------
def lucas_kan_layer_ref(x, coeffs, gamma, beta):
    degree = coeffs.shape[-1] - 1
    t = jnp.tanh(x)
    batch, in_dims = t.shape
    lucas = [jnp.full((batch, in_dims), 2.0, jnp.float32)]
    if degree > 0:
        lucas.append(t)
    for d in range(2, degree + 1):
        lucas.append(t * lucas[d - 1] + lucas[d - 2])
    lucas = jnp.stack(lucas, axis=-1)                       # (B, I, D+1)
    y = jnp.einsum('bid,iod->bo', lucas, coeffs,
                   precision=lax.Precision.HIGHEST)
    mean = jnp.mean(y, axis=-1, keepdims=True)
    var = jnp.mean((y - mean) ** 2, axis=-1, keepdims=True)
    return (y - mean) / jnp.sqrt(var + _LN_EPS) * gamma[None, :] + beta[None, :]


if __name__ == "__main__":
    layers_hidden = [8, 32, 16]
    degree = 3
    batch = 16

    key = jax.random.PRNGKey(0)
    kx, *keys = jax.random.split(key, 1 + 3 * (len(layers_hidden) - 1))
    x = jax.random.normal(kx, (batch, layers_hidden[0]), jnp.float32)

    layer_params = []
    kidx = 0
    for i_dim, o_dim in zip(layers_hidden[:-1], layers_hidden[1:]):
        kc, kg, kb = keys[kidx], keys[kidx + 1], keys[kidx + 2]
        kidx += 3
        std = 1.0 / (i_dim * (degree + 1))                  # module init
        coeffs = std * jax.random.normal(kc, (i_dim, o_dim, degree + 1), jnp.float32)
        # Perturb LayerNorm params so the gamma/beta path is actually exercised.
        gamma = 1.0 + 0.1 * jax.random.normal(kg, (o_dim,), jnp.float32)
        beta = 0.1 * jax.random.normal(kb, (o_dim,), jnp.float32)
        layer_params.append((coeffs, gamma, beta))

    # Fused Pallas forward through the whole stack (single kernel launch).
    y = jax.block_until_ready(lucas_kan_forward(x, layer_params))

    # Reference forward.
    y_ref = x
    for coeffs, gamma, beta in layer_params:
        y_ref = lucas_kan_layer_ref(y_ref, coeffs, gamma, beta)

    assert y.shape == (batch, layers_hidden[-1])
    assert jnp.allclose(y, y_ref, atol=1e-3, rtol=1e-3), (y, y_ref)
    print("KERNEL_OK")
</pallas_src>

<mosaic_0001>
module attributes {stable_mosaic.version = 11 : i64} {
  func.func @_lucas_kan_stack_kernel(%arg0: i32, %arg1: memref<8x8xf32, #tpu.memory_space<vmem>>, %arg2: memref<4x8x32xf32, #tpu.memory_space<vmem>>, %arg3: memref<2x32xf32, #tpu.memory_space<vmem>>, %arg4: memref<4x32x16xf32, #tpu.memory_space<vmem>>, %arg5: memref<2x16xf32, #tpu.memory_space<vmem>>, %arg6: memref<8x16xf32, #tpu.memory_space<vmem>>) attributes {dimension_semantics = [#tpu.dimension_semantics<parallel>], iteration_bounds = array<i64: 2>, scalar_prefetch = 0 : i64, scratch_operands = 0 : i64, tpu.core_type = #tpu.core_type<tc>, window_params = [{transform_indices = @transform_0, window_bounds = array<i64: 8, 8>}, {pipeline_mode = #tpu.pipeline_mode<synchronous>, transform_indices = @transform_1, window_bounds = array<i64: 4, 8, 32>}, {pipeline_mode = #tpu.pipeline_mode<synchronous>, transform_indices = @transform_2, window_bounds = array<i64: 2, 32>}, {pipeline_mode = #tpu.pipeline_mode<synchronous>, transform_indices = @transform_3, window_bounds = array<i64: 4, 32, 16>}, {pipeline_mode = #tpu.pipeline_mode<synchronous>, transform_indices = @transform_4, window_bounds = array<i64: 2, 16>}, {transform_indices = @transform_5, window_bounds = array<i64: 8, 16>}]} {
    %c0 = arith.constant 0 : index
    %c0_0 = arith.constant 0 : index
    %0 = vector.load %arg1[%c0, %c0_0] : memref<8x8xf32, #tpu.memory_space<vmem>>, vector<8x8xf32>
    %1 = math.tanh %0 : vector<8x8xf32>
    %c0_1 = arith.constant 0 : index
    %c0_2 = arith.constant 0 : index
    %c0_3 = arith.constant 0 : index
    %2 = vector.load %arg2[%c0_1, %c0_2, %c0_3] : memref<4x8x32xf32, #tpu.memory_space<vmem>>, vector<1x8x32xf32>
    %3 = vector.shape_cast %2 : vector<1x8x32xf32> to vector<8x32xf32>
    %cst = arith.constant dense<0.000000e+00> : vector<32xf32>
    %4 = vector.multi_reduction <add>, %3, %cst [0] : vector<8x32xf32> to vector<32xf32>
    %5 = vector.shape_cast %4 : vector<32xf32> to vector<1x32xf32>
    %cst_4 = arith.constant 2.000000e+00 : f32
    %6 = vector.broadcast %cst_4 : f32 to vector<1x32xf32>
    %7 = arith.mulf %6, %5 : vector<1x32xf32>
    %c1 = arith.constant 1 : index
    %c0_5 = arith.constant 0 : index
    %c0_6 = arith.constant 0 : index
    %8 = vector.load %arg2[%c1, %c0_5, %c0_6] : memref<4x8x32xf32, #tpu.memory_space<vmem>>, vector<1x8x32xf32>
    %9 = vector.shape_cast %8 : vector<1x8x32xf32> to vector<8x32xf32>
    %cst_7 = arith.constant dense<0.000000e+00> : vector<8x32xf32>
    %10 = tpu.matmul %1, %9, %cst_7 {dimension_numbers = #tpu.dot_dimension_numbers<[1], [0], [0], [1], [0, 0, 1, 1], [], []>, precision = #tpu.contract_precision<fp32>} : vector<8x8xf32>, vector<8x32xf32>, vector<8x32xf32> -> vector<8x32xf32>
    %11 = vector.broadcast %7 : vector<1x32xf32> to vector<8x32xf32>
    %12 = arith.addf %10, %11 : vector<8x32xf32>
    %13 = arith.mulf %1, %1 : vector<8x8xf32>
    %cst_8 = arith.constant 2.000000e+00 : f32
    %14 = vector.broadcast %cst_8 : f32 to vector<8x8xf32>
    %15 = arith.addf %13, %14 : vector<8x8xf32>
    %c2 = arith.constant 2 : index
    %c0_9 = arith.constant 0 : index
    %c0_10 = arith.constant 0 : index
    %16 = vector.load %arg2[%c2, %c0_9, %c0_10] : memref<4x8x32xf32, #tpu.memory_space<vmem>>, vector<1x8x32xf32>
    %17 = vector.shape_cast %16 : vector<1x8x32xf32> to vector<8x32xf32>
    %cst_11 = arith.constant dense<0.000000e+00> : vector<8x32xf32>
    %18 = tpu.matmul %15, %17, %cst_11 {dimension_numbers = #tpu.dot_dimension_numbers<[1], [0], [0], [1], [0, 0, 1, 1], [], []>, precision = #tpu.contract_precision<fp32>} : vector<8x8xf32>, vector<8x32xf32>, vector<8x32xf32> -> vector<8x32xf32>
    %19 = arith.addf %12, %18 : vector<8x32xf32>
    %20 = arith.mulf %1, %15 : vector<8x8xf32>
    %21 = arith.addf %20, %1 : vector<8x8xf32>
    %c3 = arith.constant 3 : index
    %c0_12 = arith.constant 0 : index
    %c0_13 = arith.constant 0 : index
    %22 = vector.load %arg2[%c3, %c0_12, %c0_13] : memref<4x8x32xf32, #tpu.memory_space<vmem>>, vector<1x8x32xf32>
    %23 = vector.shape_cast %22 : vector<1x8x32xf32> to vector<8x32xf32>
    %cst_14 = arith.constant dense<0.000000e+00> : vector<8x32xf32>
    %24 = tpu.matmul %21, %23, %cst_14 {dimension_numbers = #tpu.dot_dimension_numbers<[1], [0], [0], [1], [0, 0, 1, 1], [], []>, precision = #tpu.contract_precision<fp32>} : vector<8x8xf32>, vector<8x32xf32>, vector<8x32xf32> -> vector<8x32xf32>
    %25 = arith.addf %19, %24 : vector<8x32xf32>
    %cst_15 = arith.constant dense<0.000000e+00> : vector<8xf32>
    %26 = vector.multi_reduction <add>, %25, %cst_15 [1] : vector<8x32xf32> to vector<8xf32>
    %27 = vector.shape_cast %26 : vector<8xf32> to vector<8x1xf32>
    %cst_16 = arith.constant 3.200000e+01 : f32
    %28 = vector.broadcast %cst_16 : f32 to vector<8x1xf32>
    %29 = arith.divf %27, %28 : vector<8x1xf32>
    %30 = vector.broadcast %29 : vector<8x1xf32> to vector<8x32xf32>
    %31 = arith.subf %25, %30 : vector<8x32xf32>
    %32 = arith.mulf %31, %31 : vector<8x32xf32>
    %cst_17 = arith.constant dense<0.000000e+00> : vector<8xf32>
    %33 = vector.multi_reduction <add>, %32, %cst_17 [1] : vector<8x32xf32> to vector<8xf32>
    %34 = vector.shape_cast %33 : vector<8xf32> to vector<8x1xf32>
    %cst_18 = arith.constant 3.200000e+01 : f32
    %35 = vector.broadcast %cst_18 : f32 to vector<8x1xf32>
    %36 = arith.divf %34, %35 : vector<8x1xf32>
    %cst_19 = arith.constant 9.99999974E-6 : f32
    %37 = vector.broadcast %cst_19 : f32 to vector<8x1xf32>
    %38 = arith.addf %36, %37 : vector<8x1xf32>
    %39 = math.rsqrt %38 : vector<8x1xf32>
    %40 = vector.broadcast %39 : vector<8x1xf32> to vector<8x32xf32>
    %41 = arith.mulf %31, %40 : vector<8x32xf32>
    %c0_20 = arith.constant 0 : index
    %c0_21 = arith.constant 0 : index
    %42 = vector.load %arg3[%c0_20, %c0_21] : memref<2x32xf32, #tpu.memory_space<vmem>>, vector<2x32xf32>
    %43 = vector.extract_strided_slice %42 {offsets = [0, 0], sizes = [1, 32], strides = [1, 1]} : vector<2x32xf32> to vector<1x32xf32>
    %44 = vector.broadcast %43 : vector<1x32xf32> to vector<8x32xf32>
    %45 = arith.mulf %41, %44 : vector<8x32xf32>
    %46 = vector.extract_strided_slice %42 {offsets = [1, 0], sizes = [1, 32], strides = [1, 1]} : vector<2x32xf32> to vector<1x32xf32>
    %47 = vector.broadcast %46 : vector<1x32xf32> to vector<8x32xf32>
    %48 = arith.addf %45, %47 : vector<8x32xf32>
    %49 = math.tanh %48 : vector<8x32xf32>
    %c0_22 = arith.constant 0 : index
    %c0_23 = arith.constant 0 : index
    %c0_24 = arith.constant 0 : index
    %50 = vector.load %arg4[%c0_22, %c0_23, %c0_24] : memref<4x32x16xf32, #tpu.memory_space<vmem>>, vector<1x32x16xf32>
    %51 = vector.shape_cast %50 : vector<1x32x16xf32> to vector<32x16xf32>
    %cst_25 = arith.constant dense<0.000000e+00> : vector<16xf32>
    %52 = vector.multi_reduction <add>, %51, %cst_25 [0] : vector<32x16xf32> to vector<16xf32>
    %53 = vector.shape_cast %52 : vector<16xf32> to vector<1x16xf32>
    %cst_26 = arith.constant 2.000000e+00 : f32
    %54 = vector.broadcast %cst_26 : f32 to vector<1x16xf32>
    %55 = arith.mulf %54, %53 : vector<1x16xf32>
    %c1_27 = arith.constant 1 : index
    %c0_28 = arith.constant 0 : index
    %c0_29 = arith.constant 0 : index
    %56 = vector.load %arg4[%c1_27, %c0_28, %c0_29] : memref<4x32x16xf32, #tpu.memory_space<vmem>>, vector<1x32x16xf32>
    %57 = vector.shape_cast %56 : vector<1x32x16xf32> to vector<32x16xf32>
    %cst_30 = arith.constant dense<0.000000e+00> : vector<8x16xf32>
    %58 = tpu.matmul %49, %57, %cst_30 {dimension_numbers = #tpu.dot_dimension_numbers<[1], [0], [0], [1], [0, 0, 1, 1], [], []>, precision = #tpu.contract_precision<fp32>} : vector<8x32xf32>, vector<32x16xf32>, vector<8x16xf32> -> vector<8x16xf32>
    %59 = vector.broadcast %55 : vector<1x16xf32> to vector<8x16xf32>
    %60 = arith.addf %58, %59 : vector<8x16xf32>
    %61 = arith.mulf %49, %49 : vector<8x32xf32>
    %cst_31 = arith.constant 2.000000e+00 : f32
    %62 = vector.broadcast %cst_31 : f32 to vector<8x32xf32>
    %63 = arith.addf %61, %62 : vector<8x32xf32>
    %c2_32 = arith.constant 2 : index
    %c0_33 = arith.constant 0 : index
    %c0_34 = arith.constant 0 : index
    %64 = vector.load %arg4[%c2_32, %c0_33, %c0_34] : memref<4x32x16xf32, #tpu.memory_space<vmem>>, vector<1x32x16xf32>
    %65 = vector.shape_cast %64 : vector<1x32x16xf32> to vector<32x16xf32>
    %cst_35 = arith.constant dense<0.000000e+00> : vector<8x16xf32>
    %66 = tpu.matmul %63, %65, %cst_35 {dimension_numbers = #tpu.dot_dimension_numbers<[1], [0], [0], [1], [0, 0, 1, 1], [], []>, precision = #tpu.contract_precision<fp32>} : vector<8x32xf32>, vector<32x16xf32>, vector<8x16xf32> -> vector<8x16xf32>
    %67 = arith.addf %60, %66 : vector<8x16xf32>
    %68 = arith.mulf %49, %63 : vector<8x32xf32>
    %69 = arith.addf %68, %49 : vector<8x32xf32>
    %c3_36 = arith.constant 3 : index
    %c0_37 = arith.constant 0 : index
    %c0_38 = arith.constant 0 : index
    %70 = vector.load %arg4[%c3_36, %c0_37, %c0_38] : memref<4x32x16xf32, #tpu.memory_space<vmem>>, vector<1x32x16xf32>
    %71 = vector.shape_cast %70 : vector<1x32x16xf32> to vector<32x16xf32>
    %cst_39 = arith.constant dense<0.000000e+00> : vector<8x16xf32>
    %72 = tpu.matmul %69, %71, %cst_39 {dimension_numbers = #tpu.dot_dimension_numbers<[1], [0], [0], [1], [0, 0, 1, 1], [], []>, precision = #tpu.contract_precision<fp32>} : vector<8x32xf32>, vector<32x16xf32>, vector<8x16xf32> -> vector<8x16xf32>
    %73 = arith.addf %67, %72 : vector<8x16xf32>
    %cst_40 = arith.constant dense<0.000000e+00> : vector<8xf32>
    %74 = vector.multi_reduction <add>, %73, %cst_40 [1] : vector<8x16xf32> to vector<8xf32>
    %75 = vector.shape_cast %74 : vector<8xf32> to vector<8x1xf32>
    %cst_41 = arith.constant 1.600000e+01 : f32
    %76 = vector.broadcast %cst_41 : f32 to vector<8x1xf32>
    %77 = arith.divf %75, %76 : vector<8x1xf32>
    %78 = vector.broadcast %77 : vector<8x1xf32> to vector<8x16xf32>
    %79 = arith.subf %73, %78 : vector<8x16xf32>
    %80 = arith.mulf %79, %79 : vector<8x16xf32>
    %cst_42 = arith.constant dense<0.000000e+00> : vector<8xf32>
    %81 = vector.multi_reduction <add>, %80, %cst_42 [1] : vector<8x16xf32> to vector<8xf32>
    %82 = vector.shape_cast %81 : vector<8xf32> to vector<8x1xf32>
    %cst_43 = arith.constant 1.600000e+01 : f32
    %83 = vector.broadcast %cst_43 : f32 to vector<8x1xf32>
    %84 = arith.divf %82, %83 : vector<8x1xf32>
    %cst_44 = arith.constant 9.99999974E-6 : f32
    %85 = vector.broadcast %cst_44 : f32 to vector<8x1xf32>
    %86 = arith.addf %84, %85 : vector<8x1xf32>
    %87 = math.rsqrt %86 : vector<8x1xf32>
    %88 = vector.broadcast %87 : vector<8x1xf32> to vector<8x16xf32>
    %89 = arith.mulf %79, %88 : vector<8x16xf32>
    %c0_45 = arith.constant 0 : index
    %c0_46 = arith.constant 0 : index
    %90 = vector.load %arg5[%c0_45, %c0_46] : memref<2x16xf32, #tpu.memory_space<vmem>>, vector<2x16xf32>
    %91 = vector.extract_strided_slice %90 {offsets = [0, 0], sizes = [1, 16], strides = [1, 1]} : vector<2x16xf32> to vector<1x16xf32>
    %92 = vector.broadcast %91 : vector<1x16xf32> to vector<8x16xf32>
    %93 = arith.mulf %89, %92 : vector<8x16xf32>
    %94 = vector.extract_strided_slice %90 {offsets = [1, 0], sizes = [1, 16], strides = [1, 1]} : vector<2x16xf32> to vector<1x16xf32>
    %95 = vector.broadcast %94 : vector<1x16xf32> to vector<8x16xf32>
    %96 = arith.addf %93, %95 : vector<8x16xf32>
    %c0_47 = arith.constant 0 : index
    %c0_48 = arith.constant 0 : index
    %97 = vector.load %arg6[%c0_47, %c0_48] : memref<8x16xf32, #tpu.memory_space<vmem>>, vector<8x16xf32>
    tpu.vector_store %arg6[%c0_47, %c0_48], %96 {strides = array<i32>} : memref<8x16xf32, #tpu.memory_space<vmem>>, vector<8x16xf32>,
    return
  }
  func.func @transform_0(%arg0: i32) -> (i32, i32) {
    %c0_i32 = arith.constant 0 : i32
    %c0_i32_0 = arith.constant 0 : i32
    return %arg0, %c0_i32 : i32, i32
  }
  func.func @transform_1(%arg0: i32) -> (i32, i32, i32) {
    %c0_i32 = arith.constant 0 : i32
    %c0_i32_0 = arith.constant 0 : i32
    %c0_i32_1 = arith.constant 0 : i32
    %c0_i32_2 = arith.constant 0 : i32
    return %c0_i32, %c0_i32_0, %c0_i32_1 : i32, i32, i32
  }
  func.func @transform_2(%arg0: i32) -> (i32, i32) {
    %c0_i32 = arith.constant 0 : i32
    %c0_i32_0 = arith.constant 0 : i32
    %c0_i32_1 = arith.constant 0 : i32
    return %c0_i32, %c0_i32_0 : i32, i32
  }
  func.func @transform_3(%arg0: i32) -> (i32, i32, i32) {
    %c0_i32 = arith.constant 0 : i32
    %c0_i32_0 = arith.constant 0 : i32
    %c0_i32_1 = arith.constant 0 : i32
    %c0_i32_2 = arith.constant 0 : i32
    return %c0_i32, %c0_i32_0, %c0_i32_1 : i32, i32, i32
  }
  func.func @transform_4(%arg0: i32) -> (i32, i32) {
    %c0_i32 = arith.constant 0 : i32
    %c0_i32_0 = arith.constant 0 : i32
    %c0_i32_1 = arith.constant 0 : i32
    return %c0_i32, %c0_i32_0 : i32, i32
  }
  func.func @transform_5(%arg0: i32) -> (i32, i32) {
    %c0_i32 = arith.constant 0 : i32
    %c0_i32_0 = arith.constant 0 : i32
    return %arg0, %c0_i32 : i32, i32
  }
}

</mosaic_0001>

<bundles_post_ra>
// kernel: tpu_custom_call.1
= control target key start
LH: loop header
LB: loop body
LE: loop exit
PB: predicated region body
PF: predicated region fallthrough
CT: control target
= control target key end

     0   :  { %10 = vsyncpa [#allocation3], 0  ;;  %s4432_s0 = inlined_call_operand.vmem [shape: f32[16,8], index: 0, kind: input, shape index: {}]   ;;  %s4433_s1 = inlined_call_operand.vmem [shape: f32[4,8,32], index: 1, kind: input, shape index: {}]   ;;  %s4434_s2 = inlined_call_operand.vmem [shape: f32[2,32], index: 2, kind: input, shape index: {}]   ;;  %s4435_s3 = inlined_call_operand.vmem [shape: f32[4,32,16], index: 3, kind: input, shape index: {}]   ;;  %s4436_s4 = inlined_call_operand.vmem [shape: f32[2,16], index: 4, kind: input, shape index: {}]   ;;  %s4437_s5 = inlined_call_operand.hbm [shape: f32[16,16], index: 5, kind: output, shape index: {}]  }
   0x1   :  { %12 = vsyncpa [#allocation3 + $0x1], 0  ;;  %s3984_s18 = smov 0   ;;  %s3986_s19 = smov 0  }
   0x2   :  { %s3988_s20 = smov 0   ;;  %s3990_s21 = smov 0  }
   0x3 LB: > { %s4005_s22 = sadd.s32 4294967295, %s3948_s21   ;;  %s3221_s23 = sadd.s32 4294967294, %s3948_s21   ;;  %s3948_s21 = sphi %s3990_s21, %s4443_s21   ;;  %s3944_s20 = sphi %s3988_s20, %s4442_s20   ;;  %s3940_s19 = sphi %s3986_s19, %s4441_s19   ;;  %s3936_s18 = sphi %s3984_s18, %s4440_s18  }
   0x4   : > { %s4009_s24 = sadd.s32 1, %s3948_s21   ;;  %s135_s25 = sadd.s32 1, %s3944_s20 }
   0x5   : > { %s132_s26 = ssub.s32 %s3948_s21, %s4009_s24  ;;  %p145_p0 = scmp.ne.s32.totalorder %s3944_s20, %s3940_s19 }
   0x6   : > { %p133_p1 = scmp.eq.s32.totalorder %s132_s26, 0  ;;  %p146_p2 = scmp.eq.s32.totalorder %s4005_s22, 1 }
   0x7   : > { %p151_p3 = scmp.ne.s32.totalorder %s3940_s19, %s3936_s18  ;;  %p152_p4 = scmp.eq.s32.totalorder %s3221_s23, 1 }
   0x8   : > { %s4020_s27 = scalar_select %p133_p1, %s3944_s20, %s135_s25  }
   0x9   : > { %p4022_p5 = por %p146_p2, %p145_p0  ;;  %p4026_p6 = por %p152_p4, %p151_p3 }
   0xa   : > { %p3224_p7 = scmp.ge.s32.totalorder %s3948_s21, 1  ;;  %p189_p8 = scmp.lt.s32.totalorder %s3948_s21, 3 }
   0xc   : > { %p190_p9 = pnand %p3224_p7, %p189_p8 }
   0xd   : > { %v3227_v0 = vld [vmem:[%s4433_s1 + $0x8] sm:$0xff] (!%p190_p9)  ;;  %p216_p10 = scmp.lt.s32.totalorder (!%p190_p9), %s4005_s22, 1  ;;  %v3950_v1 = vmov (!%p190_p9), 0.0   ;;  %vm3951_vm0 = vmmov (!%p190_p9), 0   ;;  %vm234_vm1 = vcmask (!%p190_p9), 64512   ;;  %v3228_v21 = vld [vmem:[%s4433_s1 + $0x10] sm:$0xff] (!%p190_p9) }
   0xe   : > { %193 = sbr.rel (%p190_p9) target bundleno = 1350 (0x546), region = 40  ;;  %3377 = vmatprep.subr.mxu0 (!%p190_p9), %v3950_v1  ;;  %v239_v2 = vand.u32 (!%p190_p9), 4294901760, %v3227_v0  ;;  %3379 = vmatprep.mubr.msk.f32.mxu0 (!%p190_p9), %vm3951_vm0, %v3950_v1  ;;  %v692_v23 = vand.u32 (!%p190_p9), 4294901760, %v3228_v21  ;;  %v3229_v32 = vld [vmem:[%s4433_s1 + $0x18] sm:$0xff] (!%p190_p9)  ;;  %v222_v45 = vld [vmem:[%s4433_s1] sm:$0xff] (!%p190_p9)  ;;  %vm223_vm2 = vcmask (!%p190_p9), 261120  }
   0xf   : > { %3372 = vmatprep.subr.mxu1 (!%p190_p9), %v3950_v1  ;;  %3374 = vmatprep.mubr.msk.f32.mxu1 (!%p190_p9), %vm3951_vm0, %v3950_v1  ;;  %v1146_v34 = vand.u32 (!%p190_p9), 4294901760, %v3229_v32  ;;  %v224_v46 = vsel (!%p190_p9), %vm223_vm2, %v222_v45, 0.0  ;;  %vm1622_vm3 = vcmask (!%p190_p9), 130048   ;;  %s213_s26 = sand.u32 (!%p190_p9), 1, %s3940_s19  }
  0x10   : > { %v316_v3 = vsub.f32 (!%p190_p9), %v3227_v0, %v239_v2  ;;  %3373 = vmatpush3.msra.mxu1 (!%p190_p9), %v239_v2  ;;  %v769_v25 = vsub.f32 (!%p190_p9), %v3228_v21, %v692_v23  ;;  %v225_v47 = vrot.slane (!%p190_p9), %v224_v46, 4  ;;  %v3230_v0 = vld [vmem:[%s4435_s3 + $0x20] sm:$0xff] (!%p190_p9)  ;;  %s3225_s30 = sshll.u32 (!%p190_p9), %s213_s26, 3  ;;  %s3149_s14 = scalar_lea.sflag (!%p190_p9), [#allocation3], %s213_s26 }
  0x11   : > { %v1223_v36 = vsub.f32 (!%p190_p9), %v3229_v32, %v1146_v34  ;;  %s215_s9 = scalar_lea.vmem (!%p190_p9), [#allocation2], %s3225_s30 }
  0x12   : > { %v317_v4 = vand.u32 (!%p190_p9), 4294901760, %v316_v3  ;;  %v770_v27 = vand.u32 (!%p190_p9), 4294901760, %v769_v25  ;;  %v226_v48 = vadd.f32 (!%p190_p9), %v225_v47, %v224_v46  ;;  %s3162_s10 = sshll.u32 (!%p190_p9), %s215_s9, 4  ;;  %s4391_s10 = int_to_ptr.vmem [resolvable:$true] %s3162_s10 }
  0x13   : > { %v1224_v38 = vand.u32 (!%p190_p9), 4294901760, %v1223_v36  ;;  %s3886_s15 = scalar_lea.vmem (!%p190_p9), %s4391_s10, 128 }
  0x14   : > { %v318_v6 = vsub.f32 (!%p190_p9), %v316_v3, %v317_v4  ;;  %v771_v29 = vsub.f32 (!%p190_p9), %v769_v25, %v770_v27  ;;  %v227_v49 = vrot.slane (!%p190_p9), %v226_v48, 2  ;;  %p3887_p11 = scmp.ne.s32.totalorder (!%p190_p9), %s4391_s10, %s3886_s15 }
  0x15   : > { %s217_s7 = scalar_select %p216_p10, %s4005_s22, 1  ;;  %v1225_v40 = vsub.f32 %v1223_v36, %v1224_v38 }
  0x16   : > { %v319_v7 = vand.u32 4294901760, %v318_v6  ;;  %v772_v31 = vand.u32 4294901760, %v771_v29  ;;  %v228_v50 = vadd.f32 %v227_v49, %v226_v48  ;;  %v3234_v48 = vld [vmem:[%s4435_s3 + $0x40] sm:$0xff]  ;;  %v3235_v49 = vld [vmem:[%s4435_s3 + $0x48] sm:$0xff]  ;;  %p3888_p12 = pnand %p3887_p11, %p4022_p5 }
  0x17   : > { %s3226_s8 = sshll.u32 %s217_s7, 3  ;;  %v1226_v42 = vand.u32 4294901760, %v1225_v40  ;;  %v1606_v40 = vld [vmem:[%s4434_s2] sm:$0x3] }
  0x18   : > { %s219_s11 = scalar_lea.vmem %s4432_s0, %s3226_s8  ;;  %3378 = vmatpush3.msra.mxu0 %v319_v7  ;;  %v229_v51 = vrot.slane %v228_v50, 1  ;;  %v3233_v7 = vld [vmem:[%s4435_s3 + $0x38] sm:$0xff]  ;;  %s3243_s8 = sshll.u32 %s4005_s22, 7 }
  0x19   : > { %v220_v5 = vld [vmem:[%s219_s11] sm:$0xff]  ;;  %3382 = vmatprep.subr.mxu0 %v3950_v1  ;;  %s4389_s13 = scalar_lea.hbm %s4437_s5, %s3243_s8  ;;  %p3889_p13 = pneg %p3888_p12 }
  0x1a   : > { %3878 = vtanh.f32 %v220_v5  ;;  %v230_v52 = vadd.f32 %v229_v51, %v228_v50  ;;  %v1646_v5 = vand.u32 4294901760, %v3230_v0  ;;  %v2141_v50 = vand.u32 4294901760, %v3234_v48  ;;  %s3953_s22 = smov [#allocation2]  }
  0x1b   : > { %v2144_v51 = vand.u32 4294901760, %v3235_v49  ;;  %s3890_s16 = sshll.u32 %s3953_s22, 4  ;;  %s3891_s16 = int_to_ptr.vmem [resolvable:$false] %s3890_s16 }
  0x1c   : > { %v231_v53 = vmul.f32 2.0, %v230_v52  ;;  %v3236_v52 = vld [vmem:[%s4435_s3 + $0x50] sm:$0xff]  ;;  %s3892_s17 = scalar_lea.vmem %s3891_s16, 256  ;;  %p3893_p0 = scmp.lt.s32.totalorder %s4391_s10, %s3891_s16 }
  0x1d   : > { %p3894_p1 = scmp.lt.s32.totalorder %s3892_s17, %s3886_s15 }
  0x1f   : > { %p3895_p2 = por %p3894_p1, %p3893_p0 }
  0x21   : > { %p3896_p3 = pnand %p3895_p2, %p3889_p13 }
  0x24   : > { %v3879_v8 = vpop.eup %3878 }
  0x25   : > { %v236_v9 = vsel %vm234_vm1, %v3879_v8, 0  ;;  %v684_v10 = vmul.f32 %v3879_v8, %v3879_v8 }
  0x26   : > { %v304_v11 = vand.u32 4294901760, %v236_v9 }
  0x27   : > { %v685_v12 = vadd.f32 2.0, %v684_v10 }
  0x28   : > { %3380 = vmatmul.mubr.f32.vlgmr.msra.gmra.mrb[0].mxu0 %v304_v11  ;;  %v305_v13 = vsub.f32 %v236_v9, %v304_v11  ;;  %v1655_v9 = vand.u32 4294901760, %v3233_v7 }
  0x29   : > { %v1138_v14 = vmul.f32 %v3879_v8, %v685_v12  ;;  %3383 = vmatpush3.msra.mxu0 %v316_v3  ;;  %3384 = vmatprep.mubr.msk.f32.mxu0 %vm3951_vm0, %v3950_v1  ;;  %v689_v20 = vsel %vm234_vm1, %v685_v12, 0  ;;  %v3232_v3 = vld [vmem:[%s4435_s3 + $0x30] sm:$0xff] }
  0x2a   : > { %3387 = vmatprep.subr.mxu0 %v3950_v1  ;;  %v306_v15 = vand.u32 4294901760, %v305_v13  ;;  %v757_v22 = vand.u32 4294901760, %v689_v20 }
  0x2b   : > { %v1139_v16 = vadd.f32 %v3879_v8, %v1138_v14  ;;  %v1652_v8 = vand.u32 4294901760, %v3232_v3  ;;  %v4135_v14 = vsub.f32 %v3233_v7, %v1655_v9 }
  0x2c   : > { %v307_v17 = vsub.f32 %v305_v13, %v306_v15  ;;  %v758_v24 = vsub.f32 %v689_v20, %v757_v22 }
  0x2d   : > { %v1143_v18 = vsel %vm234_vm1, %v1139_v16, 0 }
  0x2e   : > { %v308_v19 = vand.u32 4294901760, %v307_v17  ;;  %v759_v26 = vand.u32 4294901760, %v758_v24  ;;  %v1211_v33 = vand.u32 4294901760, %v1143_v18 }
  0x30   : > { %3385 = vmatmul.mubr.f32.vlgmr.msra.gmra.mrb[0].mxu0 %v305_v13  ;;  %3375 = vmatmul.mubr.f32.vlgmr.msra.gmra.mrb[0].mxu1 %v308_v19  ;;  %v760_v28 = vsub.f32 %v758_v24, %v759_v26  ;;  %v1212_v35 = vsub.f32 %v1143_v18, %v1211_v33  ;;  %v4133_v13 = vsub.f32 %v3232_v3, %v1652_v8 }
  0x31   : > { %3388 = vmatpush3.msra.mxu0 %v239_v2  ;;  %3389 = vmatprep.mubr.msk.f32.mxu0 %vm3951_vm0, %v3950_v1 }
  0x32   : > { %3392 = vmatprep.subr.mxu0 %v3950_v1  ;;  %3525 = vmatprep.mubr.msk.f32.mxu1 %vm3951_vm0, %v3950_v1  ;;  %v761_v30 = vand.u32 4294901760, %v760_v28  ;;  %v1213_v37 = vand.u32 4294901760, %v1212_v35 }
  0x34   : > { %v1214_v39 = vsub.f32 %v1212_v35, %v1213_v37 }
  0x36   : > { %v1215_v41 = vand.u32 4294901760, %v1214_v39 }
  0x38   : > { %3390 = vmatmul.mubr.f32.vlgmr.msra.gmra.mrb[0].mxu0 %v306_v15  ;;  %v4138_v15 = vpack.c.bf16 %v1655_v9, %v1652_v8 }
  0x39   : > { %3393 = vmatpush3.msra.mxu0 %v317_v4  ;;  %3394 = vmatprep.mubr.msk.f32.mxu0 %vm3951_vm0, %v3950_v1  ;;  %v3952_v4 = vmov 0.0|0.0  }
  0x3a   : > { %3397 = vmatprep.subr.mxu0 %v3950_v1  ;;  %3690 = vmatprep.subr.bf16.mxu1 %v3952_v4 }
  0x40   : > { %3395 = vmatmul.mubr.f32.vlgmr.msra.gmra.mrb[0].mxu0 %v304_v11 }
  0x41   : > { %3398 = vmatpush3.msra.mxu0 %v239_v2  ;;  %3399 = vmatprep.mubr.msk.f32.mxu0 %vm3951_vm0, %v3950_v1  ;;  %v3231_v2 = vld [vmem:[%s4435_s3 + $0x28] sm:$0xff] }
  0x42   : > { %3402 = vmatprep.subr.mxu0 %v3950_v1  ;;  %v1649_v6 = vand.u32 4294901760, %v3231_v2 }
  0x44   : > { %v4127_v10 = vpack.c.bf16 %v1649_v6, %v1646_v5  ;;  %v4131_v12 = vsub.f32 %v3231_v2, %v1649_v6 }
  0x46   : > { %3692 = vmatpush3.bf16.msra.mxu1 %v4127_v10  ;;  %v1734_v17 = vand.u32 4294901760, %v4131_v12 }
  0x47   : > { %3693 = vmatprep.subr.bf16.mxu1 %v3952_v4 }
  0x48   : > { %3400 = vmatmul.mubr.f32.vlgmr.msra.gmra.mrb[0].mxu0 %v304_v11  ;;  %v4129_v11 = vsub.f32 %v3230_v0, %v1646_v5  ;;  %v1735_v19 = vsub.f32 %v4131_v12, %v1734_v17 }
  0x49   : > { %3403 = vmatpush3.msra.mxu0 %v692_v23  ;;  %3404 = vmatprep.mubr.msk.f32.mxu0 %vm3951_vm0, %v3950_v1 }
  0x4a   : > { %3407 = vmatprep.subr.mxu0 %v3950_v1  ;;  %3695 = vmatpush3.bf16.msra.mxu1 %v4138_v15  ;;  %v1727_v16 = vand.u32 4294901760, %v4129_v11  ;;  %v1736_v21 = vand.u32 4294901760, %v1735_v19 }
  0x4b   : > { %3696 = vmatprep.subr.bf16.mxu1 %v3952_v4 }
  0x4c   : > { %v1728_v18 = vsub.f32 %v4129_v11, %v1727_v16  ;;  %v4163_v32 = vpack.c.bf16 %v1734_v17, %v1727_v16 }
  0x4e   : > { %v1729_v20 = vand.u32 4294901760, %v1728_v18 }
  0x50   : > { %3405 = vmatmul.mubr.f32.vlgmr.msra.gmra.mrb[0].mxu0 %v761_v30  ;;  %v3673_v30 = vpack.c.bf16 %v4131_v12, %v4129_v11 }
  0x51   : > { %3408 = vmatpush3.msra.mxu0 %v772_v31  ;;  %3409 = vmatprep.mubr.msk.f32.mxu0 %vm3951_vm0, %v3950_v1  ;;  %v3676_v31 = vpack.c.bf16 %v4135_v14, %v4133_v13 }
  0x52   : > { %3412 = vmatprep.subr.mxu0 %v3950_v1 }
  0x58   : > { %3410 = vmatmul.mubr.f32.vlgmr.msra.gmra.mrb[0].mxu0 %v757_v22 }
  0x59   : > { %3413 = vmatpush3.msra.mxu0 %v769_v25  ;;  %3414 = vmatprep.mubr.msk.f32.mxu0 %vm3951_vm0, %v3950_v1 }
  0x5a   : > { %3417 = vmatprep.subr.mxu0 %v3950_v1 }
  0x60   : > { %3415 = vmatmul.mubr.f32.vlgmr.msra.gmra.mrb[0].mxu0 %v758_v24  ;;  %v4153_v24 = vpack.c.bf16 %v1736_v21, %v1729_v20 }
  0x61   : > { %3418 = vmatpush3.msra.mxu0 %v692_v23  ;;  %3419 = vmatprep.mubr.msk.f32.mxu0 %vm3951_vm0, %v3950_v1 }
  0x62   : > { %3422 = vmatprep.subr.mxu0 %v3950_v1 }
  0x68   : > { %3420 = vmatmul.mubr.f32.vlgmr.msra.gmra.mrb[0].mxu0 %v759_v26 }
  0x69   : > { %3423 = vmatpush3.msra.mxu0 %v770_v27  ;;  %3424 = vmatprep.mubr.msk.f32.mxu0 %vm3951_vm0, %v3950_v1 }
  0x6a   : > { %3427 = vmatprep.subr.mxu0 %v3950_v1 }
  0x70   : > { %3425 = vmatmul.mubr.f32.vlgmr.msra.gmra.mrb[0].mxu0 %v757_v22 }
  0x71   : > { %3428 = vmatpush3.msra.mxu0 %v692_v23  ;;  %3429 = vmatprep.mubr.msk.f32.mxu0 %vm3951_vm0, %v3950_v1  ;;  %v1748_v23 = vand.u32 4294901760, %v4135_v14 }
  0x72   : > { %3432 = vmatprep.subr.mxu0 %v3950_v1 }
  0x73   : > { %v1749_v26 = vsub.f32 %v4135_v14, %v1748_v23  ;;  %v3239_v14 = vld [vmem:[%s4435_s3 + $0x68] sm:$0xff] }
  0x75   : > { %v1750_v28 = vand.u32 4294901760, %v1749_v26 }
  0x78   : > { %3430 = vmatmul.mubr.f32.vlgmr.msra.gmra.mrb[0].mxu0 %v757_v22  ;;  %v1741_v22 = vand.u32 4294901760, %v4133_v13 }
  0x79   : > { %3433 = vmatpush3.msra.mxu0 %v1146_v34  ;;  %3434 = vmatprep.mubr.msk.f32.mxu0 %vm3951_vm0, %v3950_v1 }
  0x7a   : > { %3437 = vmatprep.subr.mxu0 %v3950_v1  ;;  %v1742_v25 = vsub.f32 %v4133_v13, %v1741_v22  ;;  %v3238_v13 = vld [vmem:[%s4435_s3 + $0x60] sm:$0xff] }
  0x7c   : > { %v1743_v27 = vand.u32 4294901760, %v1742_v25 }
  0x7e   : > { %v4157_v29 = vpack.c.bf16 %v1750_v28, %v1743_v27 }
  0x80   : > { %3435 = vmatmul.mubr.f32.vlgmr.msra.gmra.mrb[0].mxu0 %v1215_v41 }
  0x81   : > { %3438 = vmatpush3.msra.mxu0 %v1226_v42  ;;  %3439 = vmatprep.mubr.msk.f32.mxu0 %vm3951_vm0, %v3950_v1 }
  0x82   : > { %3442 = vmatprep.subr.mxu0 %v3950_v1 }
  0x88   : > { %3440 = vmatmul.mubr.f32.vlgmr.msra.gmra.mrb[0].mxu0 %v1211_v33 }
  0x89   : > { %3443 = vmatpush3.msra.mxu0 %v1223_v36  ;;  %3444 = vmatprep.mubr.msk.f32.mxu0 %vm3951_vm0, %v3950_v1  ;;  %v1607_v36 = vlaneseq }
  0x8a   : > { %3447 = vmatprep.subr.mxu0 %v3950_v1 }
  0x90   : > { %3445 = vmatmul.mubr.f32.vlgmr.msra.gmra.mrb[0].mxu0 %v1212_v35 }
  0x91   : > { %3448 = vmatpush3.msra.mxu0 %v1146_v34  ;;  %3449 = vmatprep.mubr.msk.f32.mxu0 %vm3951_vm0, %v3950_v1 }
  0x92   : > { %3452 = vmatprep.subr.mxu0 %v3950_v1 }
  0x98   : > { %3450 = vmatmul.mubr.f32.vlgmr.msra.gmra.mrb[0].mxu0 %v1213_v37 }
  0x99   : > { %3453 = vmatpush3.msra.mxu0 %v1224_v38  ;;  %3454 = vmatprep.mubr.msk.f32.mxu0 %vm3951_vm0, %v3950_v1  ;;  %v4167_v38 = vshrl.u32 %v1607_v36, 7 }
  0x9a   : > { %3457 = vmatprep.subr.mxu0 %v3950_v1 }
  0x9b   : > { %v1609_v39 = vsub.s32 0, %v4167_v38  ;;  %v1614_v41 = vsub.s32 1, %v4167_v38 }
  0x9d   : > { %v1610_v42 = vrot.slane %v1606_v40, %v1609_v39 }
  0xa0   : > { %3455 = vmatmul.mubr.f32.vlgmr.msra.gmra.mrb[0].mxu0 %v1211_v33 }
  0xa1   : > { %3458 = vmatpush3.msra.mxu0 %v1146_v34  ;;  %3459 = vmatprep.mubr.msk.f32.mxu0 %vm3951_vm0, %v3950_v1 }
  0xa2   : > { %3660 = vmatprep.subr.bf16.mxu0 %v3952_v4 }
  0xa8   : > { %3460 = vmatmul.mubr.f32.vlgmr.msra.gmra.mrb[0].mxu0 %v1211_v33  ;;  %v4165_v33 = vpack.c.bf16 %v1748_v23, %v1741_v22 }
  0xa9   : > { %3470 = vmatprep.mubr.msk.f32.mxu0 %vm3951_vm0, %v3950_v1  ;;  %3662 = vmatpush3.bf16.msra.mxu0 %v4127_v10 }
  0xaa   : > { %3663 = vmatprep.subr.bf16.mxu0 %v3952_v4 }
  0xad   : > { %3665 = vmatpush3.bf16.msra.mxu0 %v4138_v15 }
  0xae   : > { %3666 = vmatprep.subr.bf16.mxu0 %v3952_v4 }
 0x103   : > { %v310_v43 = vpop.f32.mrb[0].mxu1 }
 0x104   : > { %v3376_v44 = vpop.f32.mrb[1].mxu1  ;;  %v311_v54 = vadd.f32 %v310_v43, %v231_v53  ;;  %v3237_v53 = vld [vmem:[%s4435_s3 + $0x58] sm:$0xff] }
 0x105   : > { %v1615_v44 = vrot.slane %v1606_v40, %v1614_v41 }
 0x17b   : > { %v1587_v55 = vpop.f32.mrb[0].mxu0 }
 0x17c   : > { %v3769_v56 = vadd.f32 %v1587_v55, %v311_v54  ;;  %v3461_v57 = vpop.f32.mrb[1].mxu0  ;;  %v4190_v54 = vsub.f32 %v3234_v48, %v2141_v50  ;;  %v4192_v55 = vsub.f32 %v3235_v49, %v2144_v51 }
 0x17d   : > { %v2150_v57 = vand.u32 4294901760, %v3237_v53 }
 0x17e   : > { %v1592_v58 = vsel %vm223_vm2, %v3769_v56, 0.0 }
 0x17f   : > { %1593 = vadd.xlane.f32.xlu0 %v1592_v58  ;;  %v4204_v0 = vsub.f32 %v3237_v53, %v2150_v57 }
 0x181   : > { %v2243_v18 = vand.u32 4294901760, %v4204_v0 }
 0x183   : > { %v2244_v27 = vsub.f32 %v4204_v0, %v2243_v18 }
 0x185   : > { %v2245_v40 = vand.u32 4294901760, %v2244_v27 }
 0x20c   : > { %v1594_v59 = vpop.xlane.xlu0 %1593 }
 0x20d   : > { %v1596_v60 = vmul.f32 0.03125, %v1594_v59  ;;  %v4196_v59 = vpack.c.bf16 %v2144_v51, %v2141_v50 }
 0x20f   : > { %v1597_v61 = vsub.f32 %v3769_v56, %v1596_v60  ;;  %v2147_v56 = vand.u32 4294901760, %v3236_v52  ;;  %v2222_v60 = vand.u32 4294901760, %v4190_v54 }
 0x211   : > { %v1598_v62 = vmul.f32 %v1597_v61, %v1597_v61  ;;  %v4216_v7 = vpack.c.bf16 %v2150_v57, %v2147_v56  ;;  %v2223_v8 = vsub.f32 %v4190_v54, %v2222_v60 }
 0x213   : > { %v1599_v63 = vsel %vm223_vm2, %v1598_v62, 0.0  ;;  %v2224_v23 = vand.u32 4294901760, %v2223_v8 }
 0x214   : > { %1600 = vadd.xlane.f32.xlu0 %v1599_v63  ;;  %v4202_v63 = vsub.f32 %v3236_v52, %v2147_v56 }
 0x216   : > { %v2236_v17 = vand.u32 4294901760, %v4202_v63  ;;  %v3712_v11 = vpack.c.bf16 %v4204_v0, %v4202_v63 }
 0x218   : > { %v2237_v26 = vsub.f32 %v4202_v63, %v2236_v17 }
 0x2a1   : > { %v1601_v34 = vpop.xlane.xlu0 %1600 }
 0x2a2   : > { %v1602_v35 = vmul.f32 0.03125, %v1601_v34 }
 0x2a4   : > { %v1603_v37 = vadd.f32 1e-05, %v1602_v35 }
 0x2a6   : > { %3880 = vrsqrt.f32 %v1603_v37  ;;  %v2238_v37 = vand.u32 4294901760, %v2237_v26 }
 0x2b0   : > { %v3881_v43 = vpop.eup %3880 }
 0x2b1   : > { %v1605_v45 = vmul.f32 %v3881_v43, %v1597_v61  ;;  %v2229_v61 = vand.u32 4294901760, %v4192_v55  ;;  %v3706_v43 = vpack.c.bf16 %v2245_v40, %v2238_v37 }
 0x2b3   : > { %v1611_v46 = vmul.f32 %v1610_v42, %v1605_v45  ;;  %v2230_v16 = vsub.f32 %v4192_v55, %v2229_v61  ;;  %v3721_v12 = vpack.c.bf16 %v2229_v61, %v2222_v60 }
 0x2b5   : > { %v1616_v47 = vadd.f32 %v1615_v44, %v1611_v46  ;;  %v2231_v25 = vand.u32 4294901760, %v2230_v16 }
 0x2b7   : > { %3882 = vtanh.f32 %v1616_v47  ;;  %v3703_v36 = vpack.c.bf16 %v2231_v25, %v2224_v23  ;;  %v1619_v23 = vld [vmem:[%s4435_s3 + $0x8] sm:$0xff] }
 0x2c1   : > { %v4194_v58 = vpop.eup %3882 }
 0x2c2   : > { %v1643_v62 = vsel %vm223_vm2, %v4194_v58, 0  ;;  %v2130_v2 = vmul.f32 %v4194_v58, %v4194_v58 }
 0x2c3   : > { %v4208_v3 = vand.u32 4294901760, %v1643_v62 }
 0x2c4   : > { %v4210_v5 = vadd.f32 2.0, %v2130_v2 }
 0x2c5   : > { %v4213_v6 = vsub.f32 %v1643_v62, %v4208_v3  ;;  %3526 = vmatmul.mubr.f32.vlgmr.msra.gmra.mrb[2].mxu1 %v4208_v3 }
 0x2c6   : > { %3698 = vmatpush3.bf16.msra.mxu1 %v4196_v59  ;;  %3536 = vmatprep.mubr.msk.f32.mxu1 %vm3951_vm0, %v3950_v1  ;;  %v2138_v9 = vsel %vm223_vm2, %v4210_v5, 0 }
 0x2c7   : > { %3699 = vmatprep.subr.bf16.mxu1 %v3952_v4  ;;  %v1716_v19 = vand.u32 4294901760, %v4213_v6  ;;  %v4233_v20 = vand.u32 4294901760, %v2138_v9 }
 0x2c9   : > { %v1717_v21 = vsub.f32 %v4213_v6, %v1716_v19  ;;  %v2210_v22 = vsub.f32 %v2138_v9, %v4233_v20 }
 0x2ca   : > { %3701 = vmatpush3.bf16.msra.mxu1 %v4216_v7 }
 0x2cb   : > { %v1718_v28 = vand.u32 4294901760, %v1717_v21  ;;  %3702 = vmatprep.subr.bf16.mxu1 %v3952_v4  ;;  %v2211_v34 = vand.u32 4294901760, %v2210_v22 }
 0x2cd   : > { %3471 = vmatmul.mubr.f32.vlgmr.msra.gmra.mrb[2].mxu0 %v1718_v28  ;;  %v2212_v35 = vsub.f32 %v2210_v22, %v2211_v34  ;;  %v1621_v28 = vld [vmem:[%s4435_s3 + $0x18] sm:$0xff] }
 0x2ce   : > { %3668 = vmatpush3.bf16.msra.mxu0 %v4153_v24  ;;  %3481 = vmatprep.mubr.msk.f32.mxu0 %vm3951_vm0, %v3950_v1  ;;  %v3709_v24 = vpack.c.bf16 %v4192_v55, %v4190_v54 }
 0x2cf   : > { %3669 = vmatprep.subr.bf16.mxu0 %v3952_v4  ;;  %v2213_v42 = vand.u32 4294901760, %v2212_v35  ;;  %v1628_v35 = vsel %vm1622_vm3, %v1621_v28, 0.0 }
 0x2d1   : > { %3537 = vmatmul.mubr.f32.vlgmr.msra.gmra.mrb[2].mxu1 %v2213_v42 }
 0x2d2   : > { %3704 = vmatpush3.bf16.msra.mxu1 %v3703_v36  ;;  %3671 = vmatpush3.bf16.msra.mxu0 %v4157_v29  ;;  %v3724_v29 = vpack.c.bf16 %v2243_v18, %v2236_v17 }
 0x2d3   : > { %3705 = vmatprep.subr.bf16.mxu1 %v3952_v4  ;;  %3672 = vmatprep.subr.bf16.mxu0 %v3952_v4 }
 0x2d4   : > { %3547 = vmatprep.mubr.msk.f32.mxu1 %vm3951_vm0, %v3950_v1 }
 0x2d5   : > { %3482 = vmatmul.mubr.f32.vlgmr.msra.gmra.mrb[2].mxu0 %v4208_v3 }
 0x2d6   : > { %3707 = vmatpush3.bf16.msra.mxu1 %v3706_v43  ;;  %3674 = vmatpush3.bf16.msra.mxu0 %v3673_v30  ;;  %v2637_v30 = vand.u32 4294901760, %v3238_v13 }
 0x2d7   : > { %3708 = vmatprep.subr.bf16.mxu1 %v3952_v4  ;;  %3675 = vmatprep.subr.bf16.mxu0 %v3952_v4 }
 0x2d8   : > { %3492 = vmatprep.mubr.msk.f32.mxu0 %vm3951_vm0, %v3950_v1  ;;  %v2717_v45 = vsub.f32 %v3238_v13, %v2637_v30 }
 0x2d9   : > { %3548 = vmatmul.mubr.f32.vlgmr.msra.gmra.mrb[2].mxu1 %v4233_v20 }
 0x2da   : > { %3710 = vmatpush3.bf16.msra.mxu1 %v3709_v24  ;;  %3677 = vmatpush3.bf16.msra.mxu0 %v3676_v31  ;;  %v2640_v31 = vand.u32 4294901760, %v3239_v14  ;;  %v2718_v52 = vand.u32 4294901760, %v2717_v45 }
 0x2db   : > { %3711 = vmatprep.subr.bf16.mxu1 %v3952_v4  ;;  %3678 = vmatprep.subr.bf16.mxu0 %v3952_v4 }
 0x2dc   : > { %3558 = vmatprep.mubr.msk.f32.mxu1 %vm3951_vm0, %v3950_v1  ;;  %v2724_v46 = vsub.f32 %v3239_v14, %v2640_v31  ;;  %v3733_v55 = vpack.c.bf16 %v2640_v31, %v2637_v30  ;;  %v2719_v56 = vsub.f32 %v2717_v45, %v2718_v52 }
 0x2dd   : > { %3493 = vmatmul.mubr.f32.vlgmr.msra.gmra.mrb[2].mxu0 %v4213_v6 }
 0x2de   : > { %3713 = vmatpush3.bf16.msra.mxu1 %v3712_v11  ;;  %3680 = vmatpush3.bf16.msra.mxu0 %v4127_v10  ;;  %v2626_v10 = vmul.f32 %v4194_v58, %v4210_v5  ;;  %v2725_v53 = vand.u32 4294901760, %v2724_v46  ;;  %v2720_v62 = vand.u32 4294901760, %v2719_v56  ;;  %v3745_v16 = vpack.c.bf16 %v2724_v46, %v2717_v45 }
 0x2df   : > { %3714 = vmatprep.subr.bf16.mxu1 %v3952_v4  ;;  %3681 = vmatprep.subr.bf16.mxu0 %v3952_v4 }
 0x2e0   : > { %3503 = vmatprep.mubr.msk.f32.mxu0 %vm3951_vm0, %v3950_v1  ;;  %v2726_v57 = vsub.f32 %v2724_v46, %v2725_v53  ;;  %v3757_v18 = vpack.c.bf16 %v2725_v53, %v2718_v52 }
 0x2e1   : > { %3559 = vmatmul.mubr.f32.vlgmr.msra.gmra.mrb[2].mxu1 %v2210_v22  ;;  %v1618_v22 = vld [vmem:[%s4435_s3] sm:$0xff] }
 0x2e2   : > { %3716 = vmatpush3.bf16.msra.mxu1 %v4196_v59  ;;  %3683 = vmatpush3.bf16.msra.mxu0 %v4138_v15  ;;  %v2627_v15 = vadd.f32 %v4194_v58, %v2626_v10  ;;  %v2727_v63 = vand.u32 4294901760, %v2726_v57  ;;  %v1623_v25 = vsel %vm1622_vm3, %v1618_v22, 0.0 }
 0x2e3   : > { %3717 = vmatprep.subr.bf16.mxu1 %v3952_v4  ;;  %3684 = vmatprep.subr.bf16.mxu0 %v3952_v4 }
 0x2e4   : > { %3569 = vmatprep.mubr.msk.f32.mxu1 %vm3951_vm0, %v3950_v1  ;;  %v2634_v44 = vsel %vm223_vm2, %v2627_v15, 0  ;;  %v3739_v5 = vpack.c.bf16 %v2727_v63, %v2720_v62 }
 0x2e5   : > { %3504 = vmatmul.mubr.f32.vlgmr.msra.gmra.mrb[2].mxu0 %v1716_v19  ;;  %v4322_v49 = vand.u32 4294901760, %v2634_v44 }
 0x2e6   : > { %3719 = vmatpush3.bf16.msra.mxu1 %v4216_v7  ;;  %3686 = vmatpush3.bf16.msra.mxu0 %v4163_v32  ;;  %v3240_v32 = vld [vmem:[%s4435_s3 + $0x70] sm:$0xff] }
 0x2e7   : > { %3720 = vmatprep.subr.bf16.mxu1 %v3952_v4  ;;  %3687 = vmatprep.subr.bf16.mxu0 %v3952_v4  ;;  %v2643_v47 = vand.u32 4294901760, %v3240_v32  ;;  %v2706_v54 = vsub.f32 %v2634_v44, %v4322_v49 }
 0x2e8   : > { %3514 = vmatprep.mubr.msk.f32.mxu0 %vm3951_vm0, %v3950_v1 }
 0x2e9   : > { %3570 = vmatmul.mubr.f32.vlgmr.msra.gmra.mrb[2].mxu1 %v2211_v34  ;;  %v2731_v50 = vsub.f32 %v3240_v32, %v2643_v47 }
 0x2ea   : > { %3722 = vmatpush3.bf16.msra.mxu1 %v3721_v12  ;;  %3689 = vmatpush3.bf16.msra.mxu0 %v4165_v33  ;;  %v3241_v33 = vld [vmem:[%s4435_s3 + $0x78] sm:$0xff] }
 0x2eb   : > { %3723 = vmatprep.subr.bf16.mxu1 %v3952_v4  ;;  %3580 = vmatprep.mubr.msk.f32.mxu1 %vm3951_vm0, %v3950_v1  ;;  %v2646_v48 = vand.u32 4294901760, %v3241_v33  ;;  %v2732_v58 = vand.u32 4294901760, %v2731_v50 }
 0x2ed   : > { %3515 = vmatmul.mubr.f32.vlgmr.msra.gmra.mrb[2].mxu0 %v4208_v3  ;;  %v2738_v51 = vsub.f32 %v3241_v33, %v2646_v48  ;;  %v3736_v61 = vpack.c.bf16 %v2646_v48, %v2643_v47  ;;  %v2733_v0 = vsub.f32 %v2731_v50, %v2732_v58  ;;  %v3136_v48 = vld [vmem:[%s4436_s4] sm:$0x3] }
 0x2ee   : > { %3725 = vmatpush3.bf16.msra.mxu1 %v3724_v29  ;;  %v3145_v52 = vrot.slane %v3136_v48, %v1614_v41 }
 0x2ef   : > { %3726 = vmatprep.subr.bf16.mxu1 %v3952_v4  ;;  %v2739_v60 = vand.u32 4294901760, %v2738_v51  ;;  %v2734_v6 = vand.u32 4294901760, %v2733_v0  ;;  %v3748_v17 = vpack.c.bf16 %v2738_v51, %v2731_v50 }
 0x2f1   : > { %3581 = vmatmul.mubr.f32.vlgmr.msra.gmra.mrb[2].mxu1 %v4233_v20  ;;  %v2740_v2 = vsub.f32 %v2738_v51, %v2739_v60  ;;  %v3760_v19 = vpack.c.bf16 %v2739_v60, %v2732_v58 }
 0x2f2   : > { %3728 = vmatpush3.bf16.msra.mxu1 %v4196_v59  ;;  %3591 = vmatprep.mubr.msk.f32.mxu1 %vm3951_vm0, %v3950_v1  ;;  %v2707_v59 = vand.u32 4294901760, %v2706_v54 }
 0x2f3   : > { %3729 = vmatprep.subr.bf16.mxu1 %v3952_v4 }
 0x2f4   : > { %v2708_v3 = vsub.f32 %v2706_v54, %v2707_v59 }
 0x2f6   : > { %3731 = vmatpush3.bf16.msra.mxu1 %v4216_v7  ;;  %v2741_v7 = vand.u32 4294901760, %v2740_v2  ;;  %v2709_v8 = vand.u32 4294901760, %v2708_v3 }
 0x2f7   : > { %3732 = vmatprep.subr.bf16.mxu1 %v3952_v4 }
 0x2f8   : > { %v3742_v9 = vpack.c.bf16 %v2741_v7, %v2734_v6 }
 0x2f9   : > { %3592 = vmatmul.mubr.f32.vlgmr.msra.gmra.mrb[2].mxu1 %v4233_v20 }
 0x2fa   : > { %3734 = vmatpush3.bf16.msra.mxu1 %v3733_v55  ;;  %3602 = vmatprep.mubr.msk.f32.mxu1 %vm3951_vm0, %v3950_v1 }
 0x2fb   : > { %3735 = vmatprep.subr.bf16.mxu1 %v3952_v4 }
 0x2fe   : > { %3737 = vmatpush3.bf16.msra.mxu1 %v3736_v61 }
 0x2ff   : > { %3738 = vmatprep.subr.bf16.mxu1 %v3952_v4 }
 0x301   : > { %3603 = vmatmul.mubr.f32.vlgmr.msra.gmra.mrb[2].mxu1 %v2709_v8 }
 0x302   : > { %3740 = vmatpush3.bf16.msra.mxu1 %v3739_v5  ;;  %3613 = vmatprep.mubr.msk.f32.mxu1 %vm3951_vm0, %v3950_v1 }
 0x303   : > { %3741 = vmatprep.subr.bf16.mxu1 %v3952_v4 }
 0x306   : > { %3743 = vmatpush3.bf16.msra.mxu1 %v3742_v9 }
 0x307   : > { %3744 = vmatprep.subr.bf16.mxu1 %v3952_v4 }
 0x309   : > { %3614 = vmatmul.mubr.f32.vlgmr.msra.gmra.mrb[2].mxu1 %v4322_v49 }
 0x30a   : > { %3746 = vmatpush3.bf16.msra.mxu1 %v3745_v16  ;;  %3624 = vmatprep.mubr.msk.f32.mxu1 %vm3951_vm0, %v3950_v1 }
 0x30b   : > { %3747 = vmatprep.subr.bf16.mxu1 %v3952_v4 }
 0x30e   : > { %3749 = vmatpush3.bf16.msra.mxu1 %v3748_v17 }
 0x30f   : > { %3750 = vmatprep.subr.bf16.mxu1 %v3952_v4 }
 0x311   : > { %3625 = vmatmul.mubr.f32.vlgmr.msra.gmra.mrb[2].mxu1 %v2706_v54 }
 0x312   : > { %3752 = vmatpush3.bf16.msra.mxu1 %v3733_v55  ;;  %3635 = vmatprep.mubr.msk.f32.mxu1 %vm3951_vm0, %v3950_v1 }
 0x313   : > { %3753 = vmatprep.subr.bf16.mxu1 %v3952_v4 }
 0x316   : > { %3755 = vmatpush3.bf16.msra.mxu1 %v3736_v61 }
 0x317   : > { %3756 = vmatprep.subr.bf16.mxu1 %v3952_v4 }
 0x319   : > { %3636 = vmatmul.mubr.f32.vlgmr.msra.gmra.mrb[2].mxu1 %v2707_v59 }
 0x31a   : > { %3758 = vmatpush3.bf16.msra.mxu1 %v3757_v18  ;;  %3646 = vmatprep.mubr.msk.f32.mxu1 %vm3951_vm0, %v3950_v1 }
 0x31b   : > { %3759 = vmatprep.subr.bf16.mxu1 %v3952_v4 }
 0x31e   : > { %3761 = vmatpush3.bf16.msra.mxu1 %v3760_v19 }
 0x31f   : > { %3762 = vmatprep.subr.bf16.mxu1 %v3952_v4 }
 0x321   : > { %3647 = vmatmul.mubr.f32.vlgmr.msra.gmra.mrb[2].mxu1 %v4322_v49 }
 0x322   : > { %3764 = vmatpush3.bf16.msra.mxu1 %v3733_v55  ;;  %3657 = vmatprep.mubr.msk.f32.mxu1 %vm3951_vm0, %v3950_v1  ;;  %v1624_v1 = vsel %vm1622_vm3, %v1619_v23, 0.0 }
 0x323   : > { %3765 = vmatprep.subr.bf16.mxu1 %v3952_v4  ;;  %v1620_v4 = vld [vmem:[%s4435_s3 + $0x10] sm:$0xff]  ;;  %v1625_v26 = vadd.f32 %v1624_v1, %v1623_v25 }
 0x324   : > { %v1626_v27 = vsel %vm1622_vm3, %v1620_v4, 0.0 }
 0x325   : > { %v1627_v34 = vadd.f32 %v1626_v27, %v1625_v26 }
 0x326   : > { %3767 = vmatpush3.bf16.msra.mxu1 %v3736_v61 }
 0x327   : > { %v1629_v36 = vadd.f32 %v1628_v35, %v1627_v34 }
 0x329   : > { %3658 = vmatmul.mubr.f32.vlgmr.msra.gmra.mrb[2].mxu1 %v4322_v49  ;;  %v1630_v37 = vrot.slane %v1629_v36, 4  ;;  %v3140_v49 = vrot.slane %v3136_v48, %v1609_v39 }
 0x32b   : > { %v1631_v40 = vadd.f32 %v1630_v37, %v1629_v36 }
 0x32d   : > { %v1632_v42 = vrot.slane %v1631_v40, 2 }
 0x32f   : > { %v1633_v43 = vadd.f32 %v1632_v42, %v1631_v40 }
 0x331   : > { %v1634_v24 = vrot.slane %v1633_v43, 1 }
 0x333   : > { %v1635_v11 = vadd.f32 %v1634_v24, %v1633_v43 }
 0x335   : > { %v1636_v10 = vmul.f32 2.0, %v1635_v11 }
 0x3c0   : > { %v2051_v20 = vpop.f32.mrb[2].mxu0 }
 0x3c1   : > { %v3516_v21 = vpop.f32.mrb[3].mxu0  ;;  %v3770_v12 = vadd.f32 %v2051_v20, %v1636_v10 }
 0x3fc   : > { %v3117_v13 = vpop.f32.mrb[2].mxu1 }
 0x3fd   : > { %v3771_v14 = vadd.f32 %v3770_v12, %v3117_v13  ;;  %v3659_v15 = vpop.f32.mrb[3].mxu1 }
 0x3ff   : > { %v3122_v29 = vsel %vm1622_vm3, %v3771_v14, 0.0 }
 0x400   : > { %3123 = vadd.xlane.f32.xlu1 %v3122_v29 }
 0x48d   : > { %v3124_v30 = vpop.xlane.xlu1 %3123 }
 0x48e   : > { %v3126_v31 = vmul.f32 0.0625, %v3124_v30 }
 0x490   : > { %v3127_v32 = vsub.f32 %v3771_v14, %v3126_v31 }
 0x492   : > { %v3128_v33 = vmul.f32 %v3127_v32, %v3127_v32 }
 0x494   : > { %v3129_v44 = vsel %vm1622_vm3, %v3128_v33, 0.0 }
 0x495   : > { %3130 = vadd.xlane.f32.xlu1 %v3129_v44 }
 0x522   : > { %v3131_v45 = vpop.xlane.xlu1 %3130 }
 0x523   : > { %v3132_v46 = vmul.f32 0.0625, %v3131_v45 }
 0x525   : > { %v3133_v47 = vadd.f32 1e-05, %v3132_v46 }
 0x527   : > { %3884 = vrsqrt.f32 %v3133_v47 }
 0x531   : > { %v3885_v50 = vpop.eup %3884 }
 0x532   : > { %v3135_v51 = vmul.f32 %v3885_v50, %v3127_v32 }
 0x534   : > { %v3141_v53 = vmul.f32 %v3140_v49, %v3135_v51 }
 0x536   : > { %v3146_v54 = vadd.f32 %v3145_v52, %v3141_v53 }
 0x538   : > { %3147 = vst.msk [vmem:[%s215_s9] sm:$0xff] %vm1622_vm3, %v3146_v54 }
 0x539   : > { %3899 = shalt.err (!%p3896_p3)
}
 0x53a   : > { %s3900_s23 = scalar_lea.hbm %s4389_s13, 128  ;;  %s3904_s30 = scalar_lea.hbm %s4437_s5, 256 }
 0x53b   : > { %p3901_p4 = scmp.ne.s32.totalorder %s4389_s13, %s3900_s23  ;;  %p3905_p9 = scmp.lt.u32.totalorder %s4389_s13, %s4437_s5 }
 0x53c   : > { %p3906_p10 = scmp.lt.u32.totalorder %s3904_s30, %s3900_s23  ;;  %p3908_p12 = scmp.lt.u32.totalorder %s3900_s23, %s4389_s13 }
 0x53d   : > { %p3902_p7 = pnand %p3901_p4, %p4022_p5 }
 0x53e   : > { %p3907_p11 = por %p3906_p10, %p3905_p9 }
 0x53f   : > { %p3903_p8 = pneg %p3902_p7 }
 0x540   : > { %p3909_p13 = por %p3908_p12, %p3907_p11 }
 0x542   : > { %p3910_p0 = pnand %p3909_p13, %p3903_p8 }
 0x544   : > { %3913 = shalt.err (!%p3910_p0)
}
 0x545   : > { %3836 = dma.vmem_to_hbm [thread:$0]  (%p4022_p5), %s4391_s10, 128, %s4389_s13, %s3149_s14  }
 0x546 PF: > { %p3842_p1 = scmp.ge.s32.totalorder %s3948_s21, 2  ;;  %s3174_s8 = sand.u32 1, %s3936_s18  }
 0x547   : > { %s3175_s9 = scalar_lea.sflag [#allocation3], %s3174_s8 }
 0x548   : > { %p3839_p2 = pnand %p3842_p1, %p4026_p6 }
 0x54a   : > { %3931 = dma.done.wait (!%p3839_p2), %s3175_s9, 128  }
 0x54b   : > { %3933 = vsyncadd (!%p3839_p2), %s3175_s9, 4294967168  ;;  %p15_p3 = scmp.ge.s32.totalorder %s4009_s24, 4   ;;  %s4440_s18 = smov %s3940_s19 }
 0x54c   : > { %s4441_s19 = smov %s3944_s20  ;;  %s4442_s20 = smov %s4020_s27 }
 0x54d   : > { %s4443_s21 = smov %s4009_s24  ;;  %17 = sbr.rel (!%p15_p3) target bundleno = 3 (0x3), region = 81 }
 0x554   :  { %3180 = vsyncpa [#allocation3], 1 }
 0x555   :  { %3182 = vsyncpa [#allocation3 + $0x1], 1 }

</bundles_post_ra>
